<compile_context>
chip_gen: v7x
topology: tpu7x:2x2x1
jax: 0.10.0
libtpu: 0.0.40
codegen_flags: <defaults>
</compile_context>

<pallas_src>
import jax
import jax.numpy as jnp
from jax.experimental import pallas as pl
from jax.experimental.pallas import tpu as pltpu


def _liquid_fused_kernel(x_ref, w1_ref, b1_ref, w2_ref, b2_ref, o_ref, act_ref):
    """Runs one layer per grid step; activation carried in VMEM scratch."""
    l = pl.program_id(1)

    # Load the input into the resident activation buffer on the first layer.
    @pl.when(l == 0)
    def _():
        act_ref[...] = x_ref[...].astype(jnp.float32)

    x = act_ref[...]                                   # f32 activation (B_tile, H)

    # First Linear: bf16 MXU inputs, f32 accumulation; bias add in f32.
    h = jnp.dot(x.astype(w1_ref.dtype), w1_ref[...],
                preferred_element_type=jnp.float32) + b1_ref[...]
    # LeakyReLU (nn.LeakyReLU default negative_slope = 0.01), kept in f32 (v5e-friendly).
    h = jnp.where(h > 0, h, 0.01 * h)
    # Second Linear: only the dot inputs are bf16; accumulate in f32.
    y = jnp.dot(h.astype(w2_ref.dtype), w2_ref[...],
                preferred_element_type=jnp.float32) + b2_ref[...]

    act_ref[...] = y                                   # carry to next layer step

    # Write the lane-dense output block only once, on the last layer.
    @pl.when(l == pl.num_programs(1) - 1)
    def _():
        o_ref[...] = y.astype(o_ref.dtype)


def liquid_neural_network(x, w1, b1, w2, b2, *, batch_tile=None):
    """Fused forward pass over all layers in a single pallas_call.

    x : (B, H) activations (f32)
    w1: (L, H, H) bf16, b1: (L, 1, H) f32
    w2: (L, H, H) bf16, b2: (L, 1, H) f32
    """
    B, H = x.shape
    L = w1.shape[0]

    if batch_tile is None:
        batch_tile = min(B, 512)       # large tiles amortize per-step overhead
    assert B % batch_tile == 0, "batch must divide evenly into batch_tile"
    assert batch_tile % 8 == 0 or batch_tile == B, "batch tile should be (8,)-aligned"

    grid = (B // batch_tile, L)

    return pl.pallas_call(
        _liquid_fused_kernel,
        out_shape=jax.ShapeDtypeStruct((B, H), x.dtype),
        grid_spec=pltpu.PrefetchScalarGridSpec(
            num_scalar_prefetch=0,
            grid=grid,
            in_specs=[
                # x: same block across the layer axis -> no re-DMA per layer.
                pl.BlockSpec((batch_tile, H), lambda b, l: (b, 0)),
                # weights/biases streamed per layer (leading L dim squeezed away).
                pl.BlockSpec((None, H, H), lambda b, l: (l, 0, 0)),
                pl.BlockSpec((None, 1, H), lambda b, l: (l, 0, 0)),
                pl.BlockSpec((None, H, H), lambda b, l: (l, 0, 0)),
                pl.BlockSpec((None, 1, H), lambda b, l: (l, 0, 0)),
            ],
            out_specs=pl.BlockSpec((batch_tile, H), lambda b, l: (b, 0)),
            scratch_shapes=[pltpu.VMEM((batch_tile, H), jnp.float32)],
        ),
        compiler_params=pltpu.CompilerParams(
            dimension_semantics=("parallel", "arbitrary")),
    )(x, w1, b1, w2, b2)


def init_liquid_params(key, input_size, hidden_size, num_layers,
                       weight_dtype=jnp.bfloat16, bias_dtype=jnp.float32):
    """Stacked, deterministic, PyTorch-Linear-like uniform init.

    Weights are bf16 (MXU-native); biases stay f32 (added on the f32 accumulator).
    """
    assert input_size == hidden_size, (
        "The reference forward() requires input_size == hidden_size")
    w1s, b1s, w2s, b2s = [], [], [], []
    for _ in range(num_layers):
        key, k1, k2, k3, k4 = jax.random.split(key, 5)
        bound1 = 1.0 / (input_size ** 0.5)
        bound2 = 1.0 / (hidden_size ** 0.5)
        w1s.append(jax.random.uniform(k1, (input_size, hidden_size),
                                      jnp.float32, -bound1, bound1).astype(weight_dtype))
        b1s.append(jax.random.uniform(k2, (1, hidden_size),
                                      bias_dtype, -bound1, bound1))
        w2s.append(jax.random.uniform(k3, (hidden_size, hidden_size),
                                      jnp.float32, -bound2, bound2).astype(weight_dtype))
        b2s.append(jax.random.uniform(k4, (1, hidden_size),
                                      bias_dtype, -bound2, bound2))
    return (jnp.stack(w1s), jnp.stack(b1s), jnp.stack(w2s), jnp.stack(b2s))


def _reference(x, w1, b1, w2, b2):
    """Pure-JAX reference using the same numerics (bf16 dot inputs, f32 accumulate)."""
    L = w1.shape[0]
    act = x.astype(jnp.float32)
    for l in range(L):
        h = jnp.dot(act.astype(w1.dtype), w1[l],
                    preferred_element_type=jnp.float32) + b1[l]
        h = jnp.where(h > 0, h, 0.01 * h)
        act = jnp.dot(h.astype(w2.dtype), w2[l],
                      preferred_element_type=jnp.float32) + b2[l]
    return act.astype(x.dtype)


if __name__ == "__main__":
    # Small shapes: batch=8, input_size=hidden_size=128 (lane-dense), num_layers=3.
    batch, input_size, hidden_size, num_layers = 8, 128, 128, 3

    key = jax.random.PRNGKey(0)
    key, xkey = jax.random.split(key)
    x = jax.random.normal(xkey, (batch, input_size), dtype=jnp.float32)

    w1, b1, w2, b2 = init_liquid_params(key, input_size, hidden_size, num_layers)

    out = liquid_neural_network(x, w1, b1, w2, b2)
    out = jax.block_until_ready(out)

    ref = _reference(x, w1, b1, w2, b2)
    assert out.shape == (batch, hidden_size)
    assert jnp.allclose(out, ref, atol=1e-3, rtol=1e-3), (
        float(jnp.max(jnp.abs(out - ref))))

    print("KERNEL_OK")
</pallas_src>

<mosaic_0001>
module attributes {stable_mosaic.version = 11 : i64} {
  func.func @_liquid_fused_kernel(%arg0: i32, %arg1: i32, %arg2: memref<8x128xf32, #tpu.memory_space<vmem>>, %arg3: memref<1x128x128xbf16, #tpu.memory_space<vmem>>, %arg4: memref<1x1x128xf32, #tpu.memory_space<vmem>>, %arg5: memref<1x128x128xbf16, #tpu.memory_space<vmem>>, %arg6: memref<1x1x128xf32, #tpu.memory_space<vmem>>, %arg7: memref<8x128xf32, #tpu.memory_space<vmem>>, %arg8: memref<8x128xf32, #tpu.memory_space<vmem>>) attributes {dimension_semantics = [#tpu.dimension_semantics<parallel>, #tpu.dimension_semantics<arbitrary>], iteration_bounds = array<i64: 1, 3>, scalar_prefetch = 0 : i64, scratch_operands = 1 : i64, tpu.core_type = #tpu.core_type<tc>, window_params = [{transform_indices = @transform_0, window_bounds = array<i64: 8, 128>}, {transform_indices = @transform_1, window_bounds = array<i64: 1, 128, 128>}, {transform_indices = @transform_2, window_bounds = array<i64: 1, 1, 128>}, {transform_indices = @transform_3, window_bounds = array<i64: 1, 128, 128>}, {transform_indices = @transform_4, window_bounds = array<i64: 1, 1, 128>}, {transform_indices = @transform_5, window_bounds = array<i64: 8, 128>}]} {
    %c0_i32 = arith.constant 0 : i32
    %0 = arith.cmpi eq, %arg1, %c0_i32 : i32
    %1 = arith.extui %0 : i1 to i32
    %c0_i32_0 = arith.constant 0 : i32
    %2 = arith.cmpi ne, %1, %c0_i32_0 : i32
    scf.if %2 {
      %c0_20 = arith.constant 0 : index
      %c0_21 = arith.constant 0 : index
      %29 = vector.load %arg2[%c0_20, %c0_21] : memref<8x128xf32, #tpu.memory_space<vmem>>, vector<8x128xf32>
      %c0_22 = arith.constant 0 : index
      %c0_23 = arith.constant 0 : index
      %30 = vector.load %arg8[%c0_22, %c0_23] : memref<8x128xf32, #tpu.memory_space<vmem>>, vector<8x128xf32>
      tpu.vector_store %arg8[%c0_22, %c0_23], %29 {strides = array<i32>} : memref<8x128xf32, #tpu.memory_space<vmem>>, vector<8x128xf32>,
    } else {
    }
    %c0 = arith.constant 0 : index
    %c0_1 = arith.constant 0 : index
    %3 = vector.load %arg8[%c0, %c0_1] : memref<8x128xf32, #tpu.memory_space<vmem>>, vector<8x128xf32>
    %4 = arith.truncf %3 : vector<8x128xf32> to vector<8x128xbf16>
    %c0_2 = arith.constant 0 : index
    %c0_3 = arith.constant 0 : index
    %c0_4 = arith.constant 0 : index
    %5 = vector.load %arg3[%c0_2, %c0_3, %c0_4] : memref<1x128x128xbf16, #tpu.memory_space<vmem>>, vector<1x128x128xbf16>
    %6 = vector.shape_cast %5 : vector<1x128x128xbf16> to vector<128x128xbf16>
    %cst = arith.constant dense<0.000000e+00> : vector<8x128xf32>
    %7 = tpu.matmul %4, %6, %cst {dimension_numbers = #tpu.dot_dimension_numbers<[1], [0], [0], [1], [0, 0, 1, 1], [], []>} : vector<8x128xbf16>, vector<128x128xbf16>, vector<8x128xf32> -> vector<8x128xf32>
    %c0_5 = arith.constant 0 : index
    %c0_6 = arith.constant 0 : index
    %c0_7 = arith.constant 0 : index
    %8 = vector.load %arg4[%c0_5, %c0_6, %c0_7] : memref<1x1x128xf32, #tpu.memory_space<vmem>>, vector<1x1x128xf32>
    %9 = vector.shape_cast %8 : vector<1x1x128xf32> to vector<1x128xf32>
    %10 = vector.broadcast %9 : vector<1x128xf32> to vector<8x128xf32>
    %11 = arith.addf %7, %10 : vector<8x128xf32>
    %cst_8 = arith.constant 0.000000e+00 : f32
    %12 = vector.broadcast %cst_8 : f32 to vector<8x128xf32>
    %13 = arith.cmpf ogt, %11, %12 : vector<8x128xf32>
    %cst_9 = arith.constant 0.00999999977 : f32
    %14 = vector.broadcast %cst_9 : f32 to vector<8x128xf32>
    %15 = arith.mulf %14, %11 : vector<8x128xf32>
    %16 = arith.select %13, %11, %15 : vector<8x128xi1>, vector<8x128xf32>
    %17 = arith.truncf %16 : vector<8x128xf32> to vector<8x128xbf16>
    %c0_10 = arith.constant 0 : index
    %c0_11 = arith.constant 0 : index
    %c0_12 = arith.constant 0 : index
    %18 = vector.load %arg5[%c0_10, %c0_11, %c0_12] : memref<1x128x128xbf16, #tpu.memory_space<vmem>>, vector<1x128x128xbf16>
    %19 = vector.shape_cast %18 : vector<1x128x128xbf16> to vector<128x128xbf16>
    %cst_13 = arith.constant dense<0.000000e+00> : vector<8x128xf32>
    %20 = tpu.matmul %17, %19, %cst_13 {dimension_numbers = #tpu.dot_dimension_numbers<[1], [0], [0], [1], [0, 0, 1, 1], [], []>} : vector<8x128xbf16>, vector<128x128xbf16>, vector<8x128xf32> -> vector<8x128xf32>
    %c0_14 = arith.constant 0 : index
    %c0_15 = arith.constant 0 : index
    %c0_16 = arith.constant 0 : index
    %21 = vector.load %arg6[%c0_14, %c0_15, %c0_16] : memref<1x1x128xf32, #tpu.memory_space<vmem>>, vector<1x1x128xf32>
    %22 = vector.shape_cast %21 : vector<1x1x128xf32> to vector<1x128xf32>
    %23 = vector.broadcast %22 : vector<1x128xf32> to vector<8x128xf32>
    %24 = arith.addf %20, %23 : vector<8x128xf32>
    %c0_17 = arith.constant 0 : index
    %c0_18 = arith.constant 0 : index
    %25 = vector.load %arg8[%c0_17, %c0_18] : memref<8x128xf32, #tpu.memory_space<vmem>>, vector<8x128xf32>
    tpu.vector_store %arg8[%c0_17, %c0_18], %24 {strides = array<i32>} : memref<8x128xf32, #tpu.memory_space<vmem>>, vector<8x128xf32>,
    %c2_i32 = arith.constant 2 : i32
    %26 = arith.cmpi eq, %arg1, %c2_i32 : i32
    %27 = arith.extui %26 : i1 to i32
    %c0_i32_19 = arith.constant 0 : i32
    %28 = arith.cmpi ne, %27, %c0_i32_19 : i32
    scf.if %28 {
      %c0_20 = arith.constant 0 : index
      %c0_21 = arith.constant 0 : index
      %29 = vector.load %arg7[%c0_20, %c0_21] : memref<8x128xf32, #tpu.memory_space<vmem>>, vector<8x128xf32>
      tpu.vector_store %arg7[%c0_20, %c0_21], %24 {strides = array<i32>} : memref<8x128xf32, #tpu.memory_space<vmem>>, vector<8x128xf32>,
    } else {
    }
    return
  }
  func.func @transform_0(%arg0: i32, %arg1: i32) -> (i32, i32) {
    %c0_i32 = arith.constant 0 : i32
    %c0_i32_0 = arith.constant 0 : i32
    return %arg0, %c0_i32 : i32, i32
  }
  func.func @transform_1(%arg0: i32, %arg1: i32) -> (i32, i32, i32) {
    %c0_i32 = arith.constant 0 : i32
    %c0_i32_0 = arith.constant 0 : i32
    %c0_i32_1 = arith.constant 0 : i32
    return %arg1, %c0_i32, %c0_i32_0 : i32, i32, i32
  }
  func.func @transform_2(%arg0: i32, %arg1: i32) -> (i32, i32, i32) {
    %c0_i32 = arith.constant 0 : i32
    %c0_i32_0 = arith.constant 0 : i32
    %c0_i32_1 = arith.constant 0 : i32
    return %arg1, %c0_i32, %c0_i32_0 : i32, i32, i32
  }
  func.func @transform_3(%arg0: i32, %arg1: i32) -> (i32, i32, i32) {
    %c0_i32 = arith.constant 0 : i32
    %c0_i32_0 = arith.constant 0 : i32
    %c0_i32_1 = arith.constant 0 : i32
    return %arg1, %c0_i32, %c0_i32_0 : i32, i32, i32
  }
  func.func @transform_4(%arg0: i32, %arg1: i32) -> (i32, i32, i32) {
    %c0_i32 = arith.constant 0 : i32
    %c0_i32_0 = arith.constant 0 : i32
    %c0_i32_1 = arith.constant 0 : i32
    return %arg1, %c0_i32, %c0_i32_0 : i32, i32, i32
  }
  func.func @transform_5(%arg0: i32, %arg1: i32) -> (i32, i32) {
    %c0_i32 = arith.constant 0 : i32
    %c0_i32_0 = arith.constant 0 : i32
    return %arg0, %c0_i32 : i32, i32
  }
}

</mosaic_0001>

<bundles_post_ra>
// kernel: tpu_custom_call.1
= control target key start
LH: loop header
LB: loop body
LE: loop exit
PB: predicated region body
PF: predicated region fallthrough
CT: control target
= control target key end

     0   :  { %10 = vsyncpa [#allocation4], 0  ;;  %s1379_s0 = inlined_call_operand.hbm [shape: f32[8,128], index: 0, kind: input, shape index: {}]   ;;  %s1380_s1 = inlined_call_operand.hbm [shape: bf16[3,128,128], index: 1, kind: input, shape index: {}]   ;;  %s1381_s2 = inlined_call_operand.vmem [shape: f32[3,1,128], index: 2, kind: input, shape index: {}]   ;;  %s1382_s3 = inlined_call_operand.hbm [shape: bf16[3,128,128], index: 3, kind: input, shape index: {}]   ;;  %s1383_s4 = inlined_call_operand.vmem [shape: f32[3,1,128], index: 4, kind: input, shape index: {}]   ;;  %s1384_s5 = inlined_call_operand.hbm [shape: f32[8,128], index: 5, kind: output, shape index: {}]  }
   0x1   :  { %11 = vsyncpa [#allocation7], 0 }
   0x2   :  { %13 = vsyncpa [#allocation7 + $0x1], 0 }
   0x3   :  { %14 = vsyncpa [#allocation5], 0  ;;  %s1104_s18 = smov 0   ;;  %s1106_s19 = smov 0  }
   0x4   :  { %s1108_s20 = smov 0   ;;  %s1110_s21 = smov 0  }
   0x5   :  { %s1112_s22 = smov 0   ;;  %s1114_s23 = smov 0  }
   0x6 LB: > { %s29_s24 = sadd.s32 1, %s1060_s22  ;;  %s65_s25 = sadd.s32 1, %s1052_s20  ;;  %s1064_s23 = sphi %s1114_s23, %s20_s23   ;;  %s1060_s22 = sphi %s1112_s22, %s1402_s22   ;;  %s1056_s21 = sphi %s1110_s21, %s1401_s21   ;;  %s1052_s20 = sphi %s1108_s20, %s1400_s20   ;;  %s1048_s19 = sphi %s1106_s19, %s1399_s19   ;;  %s1044_s18 = sphi %s1104_s18, %s1398_s18  }
   0x7   : > { %p30_p0 = scmp.ge.s32.totalorder %s29_s24, 3  ;;  %p72_p1 = scmp.ne.s32.totalorder %s1052_s20, %s1048_s19 }
   0x8   : > { %p73_p2 = scmp.eq.s32.totalorder %s1064_s23, 0  ;;  %p818_p4 = scmp.lt.s32.totalorder %s1064_s23, 3 }
   0x9   : > { %s1404_s24 = smov (%p30_p0, %s29_s24), 0  ;;  %s219_s27 = sand.u32 1, %s1064_s23  }
   0xa   : > { %p74_p3 = por %p73_p2, %p72_p1  ;;  %s62_s26 = ssub.s32 %s1060_s22, %s1404_s24 }
   0xb   : > { %p63_p5 = scmp.eq.s32.totalorder %s62_s26, 0  ;;  %s221_s28 = sand.u32 1, %s1052_s20  }
   0xc   : > { %s734_s29 = sshll.u32 %s1060_s22, 10  ;;  %s1150_s6 = sshll.u32 %s221_s28, 6 }
   0xd   : > { %s1148_s30 = scalar_select %p63_p5, %s1052_s20, %s65_s25  }
   0xe   : > { %s1157_s9 = scalar_lea.hbm %s1380_s1, %s734_s29  ;;  %p1159_p6 = pnand %p818_p4, %p74_p3 }
   0xf   : > { %s223_s11 = scalar_lea.vmem [#allocation6], %s1150_s6  ;;  %s1166_s13 = scalar_lea.sflag [#allocation7], %s219_s27 }
  0x10   : > { %s230_s12 = sshll.u32 %s223_s11, 4  ;;  %s892_s14 = scalar_lea.hbm %s1157_s9, 1024  ;;  %s1164_s12 = int_to_ptr.vmem [resolvable:$true] %s230_s12 }
  0x11   : > { %p893_p7 = scmp.ne.s32.totalorder %s1157_s9, %s892_s14  ;;  %p894_p8 = pneg %p1159_p6 }
  0x12   : > { %s897_s17 = scalar_lea.hbm %s1380_s1, 3072  ;;  %p898_p11 = scmp.lt.u32.totalorder %s1157_s9, %s1380_s1 }
  0x13   : > { %p895_p9 = pnand %p894_p8, %p893_p7  ;;  %p899_p12 = scmp.lt.u32.totalorder %s897_s17, %s892_s14 }
  0x14   : > { %p901_p0 = scmp.lt.u32.totalorder %s892_s14, %s1157_s9 }
  0x15   : > { %p896_p10 = pneg %p895_p9  ;;  %p900_p13 = por %p899_p12, %p898_p11 }
  0x17   : > { %p902_p1 = por %p901_p0, %p900_p13 }
  0x19   : > { %p903_p2 = pnand %p902_p1, %p896_p10 }
  0x1b   : > { %906 = shalt.err (!%p903_p2)
}
  0x1c   : > { %s907_s27 = scalar_lea.vmem %s1164_s12, 1024  ;;  %s1066_s28 = smov [#allocation6]  }
  0x1d   : > { %p908_p3 = scmp.ne.s32.totalorder %s1164_s12, %s907_s27  ;;  %s912_s7 = sshll.u32 %s1066_s28, 4  ;;  %s913_s7 = int_to_ptr.vmem [resolvable:$false] %s912_s7 }
  0x1e   : > { %s914_s8 = scalar_lea.vmem %s913_s7, 2048  ;;  %p915_p7 = scmp.lt.s32.totalorder %s1164_s12, %s913_s7 }
  0x1f   : > { %p910_p4 = pnand %p908_p3, %p894_p8  ;;  %p916_p9 = scmp.lt.s32.totalorder %s914_s8, %s907_s27 }
  0x21   : > { %p911_p5 = pneg %p910_p4  ;;  %p917_p11 = por %p916_p9, %p915_p7 }
  0x23   : > { %p918_p12 = pnand %p917_p11, %p911_p5 }
  0x25   : > { %921 = shalt.err (!%p918_p12)
}
  0x26   : > { %s1067_s11 = smov 64   ;;  %s1068_s14 = smov 4  }
  0x27   : > { %813 = dma.hbm_to_vmem [thread:$0]  (!%p1159_p6), %s1157_s9, 1024, %s1164_s12, %s1166_s13, %s1067_s11, %s1067_s11, %s1068_s14  }
  0x28   : > { %s1202_s17 = scalar_lea.hbm %s1382_s3, %s734_s29  ;;  %s250_s25 = scalar_lea.vmem [#allocation8], %s1150_s6 }
  0x29   : > { %s257_s26 = sshll.u32 %s250_s25, 4  ;;  %s1208_s27 = sadd.s32 4294967295, %s1064_s23   ;;  %s1205_s26 = int_to_ptr.vmem [resolvable:$true] %s257_s26 }
  0x2a   : > { %p78_p10 = scmp.ne.s32.totalorder %s1048_s19, %s1044_s18  ;;  %p1385_p13 = scmp.eq.s32.totalorder %s1208_s27, 0 }
  0x2b   : > { %p697_p0 = scmp.ge.s32.totalorder %s1064_s23, 1  ;;  %p193_p1 = scmp.lt.s32.totalorder %s1064_s23, 4 }
  0x2c   : > { %p1217_p2 = por %p1385_p13, %p78_p10  ;;  %s1069_s9 = smov [#allocation3]  }
  0x2d   : > { %p1221_p3 = pnand %p697_p0, %p193_p1  ;;  %s1225_s12 = sshll.u32 %s1069_s9, 4  ;;  %s209_s12 = int_to_ptr.vmem [resolvable:$true] %s1225_s12 }
  0x2e   : > { %s1389_s29 = scalar_select %p1217_p2, 1, 0 }
  0x2f   : > { %s1390_s6 = scalar_select %p1221_p3, 1, 0 }
  0x30   : > { %s922_s18 = scalar_lea.hbm %s1202_s17, 1024  ;;  %s927_s8 = scalar_lea.hbm %s1382_s3, 3072 }
  0x31   : > { %p923_p5 = scmp.ne.s32.totalorder %s1202_s17, %s922_s18  ;;  %p928_p11 = scmp.lt.u32.totalorder %s1202_s17, %s1382_s3 }
  0x32   : > { %p929_p12 = scmp.lt.u32.totalorder %s927_s8, %s922_s18  ;;  %p931_p0 = scmp.lt.u32.totalorder %s922_s18, %s1202_s17 }
  0x33   : > { %p925_p7 = pnand %p923_p5, %p894_p8 }
  0x34   : > { %p930_p10 = por %p929_p12, %p928_p11 }
  0x35   : > { %p926_p9 = pneg %p925_p7 }
  0x36   : > { %p932_p1 = por %p931_p0, %p930_p10 }
  0x38   : > { %p933_p13 = pnand %p932_p1, %p926_p9 }
  0x3a   : > { %936 = shalt.err (!%p933_p13)
}
  0x3b   : > { %s937_s25 = scalar_lea.vmem %s1205_s26, 1024  ;;  %s1070_s9 = smov [#allocation8]  }
  0x3c   : > { %p938_p5 = scmp.ne.s32.totalorder %s1205_s26, %s937_s25  ;;  %s942_s28 = sshll.u32 %s1070_s9, 4  ;;  %s943_s28 = int_to_ptr.vmem [resolvable:$false] %s942_s28 }
  0x3d   : > { %s944_s7 = scalar_lea.vmem %s943_s28, 2048  ;;  %p945_p2 = scmp.lt.s32.totalorder %s1205_s26, %s943_s28 }
  0x3e   : > { %p940_p7 = pnand %p938_p5, %p894_p8  ;;  %p946_p11 = scmp.lt.s32.totalorder %s944_s7, %s937_s25 }
  0x40   : > { %p941_p4 = pneg %p940_p7  ;;  %p947_p12 = por %p946_p11, %p945_p2 }
  0x42   : > { %p948_p10 = pnand %p947_p12, %p941_p4 }
  0x44   : > { %951 = shalt.err (!%p948_p10)
}
  0x45   : > { %816 = dma.hbm_to_vmem [thread:$0]  (!%p1159_p6), %s1202_s17, 1024, %s1205_s26, %s1166_s13, %s1067_s11, %s1067_s11, %s1068_s14  }
  0x46   : > { %p1391_p8 = scmp.eq.s32.totalorder %s1208_s27, 0  ;;  %p1392_p13 = pneg %p1221_p3 }
  0x47   : > { %s952_s15 = scalar_lea.hbm %s1379_s0, 128 }
  0x48   : > { %p1262_p9 = pnand %p1392_p13, %p1391_p8  ;;  %p953_p2 = scmp.ne.s32.totalorder %s1379_s0, %s952_s15 }
  0x49   : > { %p959_p1 = scmp.lt.u32.totalorder %s952_s15, %s1379_s0 }
  0x4a   : > { %p954_p4 = pneg %p1262_p9 }
  0x4c   : > { %p955_p6 = pnand %p954_p4, %p953_p2 }
  0x4e   : > { %p956_p0 = pneg %p955_p6 }
  0x50   : > { %p961_p5 = pnand %p959_p1, %p956_p0 }
  0x52   : > { %964 = shalt.err (!%p961_p5)
}
  0x53   : > { %s965_s14 = scalar_lea.vmem %s209_s12, 128  ;;  %p973_p10 = scmp.lt.s32.totalorder %s209_s12, %s209_s12 }
  0x54   : > { %p966_p7 = scmp.ne.s32.totalorder %s209_s12, %s965_s14  ;;  %p974_p8 = scmp.lt.s32.totalorder %s965_s14, %s965_s14 }
  0x56   : > { %p968_p11 = pnand %p966_p7, %p954_p4  ;;  %p975_p13 = por %p974_p8, %p973_p10 }
  0x58   : > { %p969_p12 = pneg %p968_p11 }
  0x5a   : > { %p976_p3 = pnand %p975_p13, %p969_p12 }
  0x5c   : > { %979 = shalt.err (!%p976_p3)
}
  0x5d   : > { %809 = dma.hbm_to_vmem [thread:$0]  (!%p1262_p9), %s1379_s0, 128, %s209_s12, [#allocation4]  }
  0x5e   : > { %p1394_p2 = scmp.ne.s32.totalorder %s1390_s6, 0 }
  0x5f   : > { %p1395_p6 = scmp.eq.s32.totalorder (!%p1394_p2), %s1208_s27, 0 }
  0x60   : > { %275 = sbr.rel (%p1394_p2) target bundleno = 611 (0x263), region = 40 }
  0x67   : > { %1031 = dma.done.wait (%p1395_p6), [#allocation4], 128   ;;  %p1396_p4 = pmov %p1395_p6 }
  0x68   : > { %s281_s9 = sand.u32 1, %s1208_s27   ;;  %s283_s28 = sand.u32 1, %s1048_s19  }
  0x69   : > { %1033 = vsyncadd (%p1396_p4), [#allocation4], 4294967168  ;;  %s708_s7 = sshll.u32 %s283_s28, 6  ;;  %s282_s18 = scalar_lea.sflag [#allocation7], %s281_s9 }
  0x6a   : > { %s1290_s8 = scalar_lea.vmem [#allocation6], %s708_s7  ;;  %p1397_p3 = scmp.ne.s32.totalorder %s1389_s29, 0 }
  0x6c   : > { %1035 = dma.done.wait (%p1397_p3), %s282_s18, 2048  }
  0x6d   : > { %1037 = vsyncadd (%p1397_p3), %s282_s18, 4294965248  ;;  %p327_p9 = scmp.lt.s32.totalorder %s1056_s21, 2  ;;  %s1308_s11 = scalar_lea.vmem [#allocation8], %s708_s7 }
  0x6e   : > { %p710_p0 = scmp.ne.s32.totalorder %s1056_s21, 0 }
  0x6f   : > { %s1298_s6 = scalar_select %p327_p9, %s1056_s21, 2 }
  0x70   : > { %337 = sbr.rel (%p710_p0) target bundleno = 119 (0x77), region = 56  ;;  %v338_v0 = vld [vmem:[#allocation3] sm:$0xff] (!%p710_p0) }
  0x71   : > { %s329_s15 = scalar_lea.vmem %s1381_s2, %s1298_s6  ;;  %s332_s13 = scalar_lea.vmem %s1383_s4, %s1298_s6  ;;  %339 = vst [vmem:[#allocation2] sm:$0xff] (!%p710_p0), %v338_v0 }
  0x77 PF: > { %v876_v1 = vld [vmem:[%s1290_s8] sm:$0xff]   ;;  %v1071_v2 = vmov 0.0   ;;  %v877_v3 = vld [vmem:[%s1290_s8 + $0x8] sm:$0xff]   ;;  %vm1072_vm0 = vmmov 0   ;;  %v878_v4 = vld [vmem:[%s1290_s8 + $0x10] sm:$0xff]   ;;  %p729_p1 = scmp.ne.s32.totalorder %s1056_s21, 2 }
  0x78   : > { %754 = vmatprep.subr.bf16.mxu0 %v1071_v2  ;;  %774 = vmatprep.subr.bf16.mxu1 %v1071_v2  ;;  %v884_v5 = vld [vmem:[%s1308_s11] sm:$0xff]   ;;  %v879_v6 = vld [vmem:[%s1290_s8 + $0x18] sm:$0xff]   ;;  %v885_v7 = vld [vmem:[%s1308_s11 + $0x8] sm:$0xff]  }
  0x79   : > { %755 = vmatpush3.bf16.msra.mxu0 %v876_v1  ;;  %770 = vmatprep.mubr.msk.bf16.mxu0 %vm1072_vm0, %v1071_v2  ;;  %v880_v8 = vld [vmem:[%s1290_s8 + $0x20] sm:$0xff]   ;;  %v886_v9 = vld [vmem:[%s1308_s11 + $0x10] sm:$0xff]   ;;  %v881_v10 = vld [vmem:[%s1290_s8 + $0x28] sm:$0xff]  }
  0x7a   : > { %756 = vmatprep.subr.bf16.mxu0 %v1071_v2  ;;  %790 = vmatprep.mubr.msk.bf16.mxu1 %vm1072_vm0, %v1071_v2  ;;  %v887_v11 = vld [vmem:[%s1308_s11 + $0x18] sm:$0xff]   ;;  %v882_v12 = vld [vmem:[%s1290_s8 + $0x30] sm:$0xff]   ;;  %v888_v13 = vld [vmem:[%s1308_s11 + $0x20] sm:$0xff]  }
  0x7b   : > { %775 = vmatpush3.bf16.msra.mxu1 %v884_v5  ;;  %v883_v14 = vld [vmem:[%s1290_s8 + $0x38] sm:$0xff]   ;;  %v340_v15 = vld [vmem:[#allocation2] sm:$0xff]  ;;  %v889_v16 = vld [vmem:[%s1308_s11 + $0x28] sm:$0xff]  }
  0x7c   : > { %776 = vmatprep.subr.bf16.mxu1 %v1071_v2  ;;  %v341_v17 = vpack.c.bf16 %v340_v15, %v340_v15  ;;  %v890_v18 = vld [vmem:[%s1308_s11 + $0x30] sm:$0xff]   ;;  %v891_v19 = vld [vmem:[%s1308_s11 + $0x38] sm:$0xff]  }
  0x7d   : > { %757 = vmatpush3.bf16.msra.mxu0 %v877_v3  ;;  %v711_v20 = vld [vmem:[%s329_s15] ss:$0 sm:$0xff] }
  0x7e   : > { %758 = vmatprep.subr.bf16.mxu0 %v1071_v2  ;;  %v720_v29 = vld [vmem:[%s332_s13] ss:$0 sm:$0xff] }
  0x7f   : > { %777 = vmatpush3.bf16.msra.mxu1 %v885_v7 }
  0x80   : > { %778 = vmatprep.subr.bf16.mxu1 %v1071_v2 }
  0x81   : > { %759 = vmatpush3.bf16.msra.mxu0 %v878_v4 }
  0x82   : > { %760 = vmatprep.subr.bf16.mxu0 %v1071_v2 }
  0x83   : > { %779 = vmatpush3.bf16.msra.mxu1 %v886_v9 }
  0x84   : > { %780 = vmatprep.subr.bf16.mxu1 %v1071_v2 }
  0x85   : > { %761 = vmatpush3.bf16.msra.mxu0 %v879_v6 }
  0x86   : > { %762 = vmatprep.subr.bf16.mxu0 %v1071_v2 }
  0x87   : > { %781 = vmatpush3.bf16.msra.mxu1 %v887_v11 }
  0x88   : > { %782 = vmatprep.subr.bf16.mxu1 %v1071_v2 }
  0x89   : > { %763 = vmatpush3.bf16.msra.mxu0 %v880_v8 }
  0x8a   : > { %764 = vmatprep.subr.bf16.mxu0 %v1071_v2 }
  0x8b   : > { %783 = vmatpush3.bf16.msra.mxu1 %v888_v13 }
  0x8c   : > { %784 = vmatprep.subr.bf16.mxu1 %v1071_v2 }
  0x8d   : > { %765 = vmatpush3.bf16.msra.mxu0 %v881_v10 }
  0x8e   : > { %766 = vmatprep.subr.bf16.mxu0 %v1071_v2 }
  0x8f   : > { %785 = vmatpush3.bf16.msra.mxu1 %v889_v16 }
  0x90   : > { %786 = vmatprep.subr.bf16.mxu1 %v1071_v2 }
  0x91   : > { %767 = vmatpush3.bf16.msra.mxu0 %v882_v12 }
  0x92   : > { %768 = vmatprep.subr.bf16.mxu0 %v1071_v2 }
  0x93   : > { %787 = vmatpush3.bf16.msra.mxu1 %v890_v18 }
  0x94   : > { %788 = vmatprep.subr.bf16.mxu1 %v1071_v2 }
  0x95   : > { %769 = vmatpush3.bf16.msra.mxu0 %v883_v14 }
  0x97   : > { %789 = vmatpush3.bf16.msra.mxu1 %v891_v19 }
  0x98   : > { %771 = vmatmul.mubr.bf16.vlgmr.msra.gmra.mrb[0].mxu0 %v341_v17 }
 0x16b   : > { %v447_v21 = vpop.f32.mrb[0].mxu0 }
 0x16c   : > { %v448_v22 = vadd.f32 %v711_v20, %v447_v21  ;;  %v772_v23 = vpop.f32.mrb[1].mxu0 }
 0x16d   : > { %v450_v24 = vpop.f32.mrb[2].mxu0 }
 0x16e   : > { %vm453_vm1 = vcmp.gt.f32.partialorder %v448_v22, 0.0  ;;  %v454_v25 = vmul.f32 0.01, %v448_v22  ;;  %v773_v26 = vpop.f32.mrb[3].mxu0 }
 0x170   : > { %v455_v27 = vsel %vm453_vm1, %v448_v22, %v454_v25 }
 0x171   : > { %v456_v28 = vpack.c.bf16 %v455_v27, %v455_v27 }
 0x173   : > { %791 = vmatmul.mubr.bf16.vlgmr.msra.gmra.mrb[0].mxu1 %v456_v28 }
 0x243   : > { %572 = sbr.rel (%p729_p1) target bundleno = 586 (0x24a), region = 60 }
 0x246   : > { %v562_v30 = vpop.f32.mrb[0].mxu1 }
 0x247   : > { %v563_v31 = vadd.f32 %v720_v29, %v562_v30  ;;  %v792_v32 = vpop.f32.mrb[1].mxu1 }
 0x248   : > { %v565_v33 = vpop.f32.mrb[2].mxu1 }
 0x249   : > { %568 = vst [vmem:[#allocation2] sm:$0xff] %v563_v31  ;;  %v793_v34 = vpop.f32.mrb[3].mxu1  ;;  %573 = vst [vmem:[#allocation9] sm:$0xff] (!%p729_p1), %v563_v31 }
 0x24a PF: > { %p820_p5 = scmp.eq.s32.totalorder %s1208_s27, 2  ;;  %s1073_s9 = smov [#allocation9]  }
 0x24b   : > { %s583_s28 = sshll.u32 %s1073_s9, 4  ;;  %s584_s28 = int_to_ptr.vmem [resolvable:$true] %s583_s28 }
 0x24c   : > { %s980_s7 = scalar_lea.vmem %s584_s28, 128  ;;  %p987_p10 = scmp.lt.s32.totalorder %s584_s28, %s584_s28 }
 0x24d   : > { %p981_p7 = scmp.ne.s32.totalorder %s584_s28, %s980_s7  ;;  %p988_p8 = scmp.lt.s32.totalorder %s980_s7, %s980_s7 }
 0x24f   : > { %p982_p11 = pnand %p981_p7, %p820_p5  ;;  %p989_p13 = por %p988_p8, %p987_p10 }
 0x251   : > { %p983_p12 = pneg %p982_p11 }
 0x253   : > { %p990_p2 = pnand %p989_p13, %p983_p12 }
 0x255   : > { %993 = shalt.err (!%p990_p2)
}
 0x256   : > { %s994_s8 = scalar_lea.hbm %s1384_s5, 128 }
 0x257   : > { %p995_p6 = scmp.ne.s32.totalorder %s1384_s5, %s994_s8  ;;  %p1000_p9 = scmp.lt.u32.totalorder %s994_s8, %s1384_s5 }
 0x259   : > { %p996_p4 = pnand %p995_p6, %p820_p5 }
 0x25b   : > { %p997_p3 = pneg %p996_p4 }
 0x25d   : > { %p1002_p0 = pnand %p1000_p9, %p997_p3 }
 0x25f   : > { %1005 = shalt.err (!%p1002_p0)
}
 0x260   : > { %803 = dma.vmem_to_hbm [thread:$0]  (%p820_p5), %s584_s28, 128, %s1384_s5, [#allocation5]  }
 0x261   : > { %1039 = dma.done.wait (%p820_p5), [#allocation5], 128  }
 0x262   : > { %1041 = vsyncadd (%p820_p5), [#allocation5], 4294967168 }
 0x263 PF: > { %s20_s23 = sadd.s32 1, %s1064_s23   ;;  %s1398_s18 = smov %s1048_s19 }
 0x264   : > { %p17_p1 = scmp.ge.s32.totalorder %s20_s23, 5   ;;  %s1399_s19 = smov %s1052_s20 }
 0x265   : > { %s1400_s20 = smov %s1148_s30  ;;  %s1401_s21 = smov %s1060_s22 }
 0x266   : > { %s1402_s22 = smov %s1404_s24  ;;  %19 = sbr.rel (!%p17_p1) target bundleno = 6 (0x6), region = 109 }
 0x26d   :  { %596 = vsyncpa [#allocation4], 1 }
 0x26e   :  { %598 = vsyncpa [#allocation4 + $0x1], 1 }
 0x26f   :  { %599 = vsyncpa [#allocation7], 1 }
 0x270   :  { %601 = vsyncpa [#allocation7 + $0x1], 1 }
 0x271   :  { %602 = vsyncpa [#allocation5], 1 }
 0x272   :  { %604 = vsyncpa [#allocation5 + $0x1], 1 }

</bundles_post_ra>
